<compile_context>
chip_gen: v7x
topology: tpu7x:2x2x1
jax: 0.10.0
libtpu: 0.0.40
codegen_flags: <defaults>
</compile_context>

<pallas_src>
import jax
import jax.numpy as jnp
from jax.experimental import pallas as pl
from jax.experimental.pallas import tpu as pltpu

# Pixel columns per grid step. Big enough (>=512) to sit near the HBM roofline,
# small enough that double-buffered blocks + elementwise temporaries stay well
# under every generation's scoped VMEM (v5e 16 MiB default, v7x 64 MiB phys).
TILE_PIX = 16384


def _round_up(x, m):
    return ((x + m - 1) // m) * m


def _autoshape_kernel(x_ref, w_ref, b_ref, o_ref):
    # x_ref : (C_in,  T)   int8  -- raw uint8 image bytes bit-reinterpreted
    # w_ref : (C_out, C_in) f32  -- detect-head weights, already folded w/ 1/255
    # b_ref : (C_out, 1)   f32   -- detect-head bias
    # o_ref : (C_out, T)   bf16  -- sigmoid(detect-head) predictions

    # int8 -> f32 recover of the original uint8 pixel value (sign-extend + fixup).
    xi = x_ref[...].astype(jnp.int32)                       # (C_in, T)
    xf = jnp.where(xi < 0, xi + 256, xi).astype(jnp.float32)

    # AutoShape preprocessing (x/255) is folded into w_ref in the wrapper.
    # 1x1 detect-head conv as unrolled VPU broadcast-FMAs (K=3 is far too small
    # for the MXU): y[o, t] = b[o] + sum_c w[o, c] * x[c, t]
    y = b_ref[...]                                          # (C_out, 1) -> bcast
    for ci in range(x_ref.shape[0]):                        # static unroll, C_in=3
        y = y + w_ref[:, ci:ci + 1] * xf[ci:ci + 1, :]      # (C_out,1)*(1,T)

    # sigmoid via EUP exp + approximate reciprocal (VALU stays free).
    sig = pl.reciprocal(1.0 + jnp.exp(-y), approx=True)
    o_ref[...] = sig.astype(o_ref.dtype)                    # single dense bf16 store


def autoshape_forward(imgs_nhwc_u8, weight, bias, *, tile_pix=TILE_PIX):
    """imgs_nhwc_u8: (N, H, W, C_in) uint8 pixels -> (N, H*W, C_out) bf16 preds."""
    n, h, w, c_in = imgs_nhwc_u8.shape
    c_out = weight.shape[1]
    pixels = n * h * w

    # ---- layout plumbing (plain JAX, one fused pass over the bytes) ----------
    # NHWC -> channel-planar (C_in, pixels) so pixels map to the lane dimension;
    # reinterpret uint8 as int8 so the kernel only needs signed converts.
    x = imgs_nhwc_u8.reshape(pixels, c_in).T                # (C_in, pixels) uint8
    x = jax.lax.bitcast_convert_type(x, jnp.int8)           # bit-preserving

    # Large lane-dense tile; pad the pixel axis to a multiple of it. Padded
    # columns produce spurious "detections" that would be masked before NMS.
    tile = min(tile_pix, _round_up(pixels, 128))
    padded = _round_up(pixels, tile)
    if padded != pixels:
        x = jnp.pad(x, ((0, 0), (0, padded - pixels)))

    # Fold AutoShape's /255 normalization into the detect-head weights.
    w_t = (weight.astype(jnp.float32) / 255.0).T            # (C_out, C_in)
    b2d = bias.astype(jnp.float32).reshape(c_out, 1)        # (C_out, 1)

    out = pl.pallas_call(
        _autoshape_kernel,
        out_shape=jax.ShapeDtypeStruct((c_out, padded), jnp.bfloat16),
        grid_spec=pltpu.PrefetchScalarGridSpec(
            num_scalar_prefetch=0,
            grid=(padded // tile,),                         # 1-D pixel-tile grid
            in_specs=[
                pl.BlockSpec((c_in, tile), lambda i: (0, i)),
                # constant index_map -> fetched once, buffer reused every step
                pl.BlockSpec((c_out, c_in), lambda i: (0, 0)),
                pl.BlockSpec((c_out, 1), lambda i: (0, 0)),
            ],
            out_specs=pl.BlockSpec((c_out, tile), lambda i: (0, i)),
        ),
        compiler_params=pltpu.CompilerParams(
            # parallel grid axis -> shardable across v7x's 2 TensorCores
            dimension_semantics=("parallel",),
            vmem_limit_bytes=32 * 1024 * 1024,
        ),
    )(x, w_t, b2d)

    out = out[:, :pixels]                                   # drop pixel padding
    return out.T.reshape(n, h * w, c_out)                   # (N, H*W, C_out)


def scale_coords_glue(boxes_xywh, shape1, shape0):
    """Plain-JAX glue: undo letterbox scaling (AutoShape.scale_coords step)."""
    gain = min(shape1[0] / shape0[0], shape1[1] / shape0[1])
    pad = ((shape1[1] - shape0[1] * gain) / 2.0,
           (shape1[0] - shape0[0] * gain) / 2.0)
    xy = (boxes_xywh[..., 0:2].astype(jnp.float32) - jnp.asarray(pad, jnp.float32)) / gain
    wh = boxes_xywh[..., 2:4].astype(jnp.float32) / gain
    return jnp.concatenate([xy, wh], axis=-1)


# TODO(synk): non_max_suppression produces data-dependent, per-image variable-
# length outputs (dynamic shapes); no clean Pallas equivalent, left out.


if __name__ == "__main__":
    key = jax.random.PRNGKey(0)
    k_img, k_w, k_b = jax.random.split(key, 3)

    # small, AutoShape-consistent shapes: 2 letterboxed RGB images, 16x16
    N, H, W, C_IN = 2, 16, 16, 3
    NC = 4                        # synthetic class count
    C_OUT = 5 + NC                # YOLO detect head: x, y, w, h, obj, classes

    imgs = jax.random.randint(k_img, (N, H, W, C_IN), 0, 256,
                              dtype=jnp.int32).astype(jnp.uint8)
    weight = 0.05 * jax.random.normal(k_w, (C_IN, C_OUT), jnp.float32)
    bias = 0.01 * jax.random.normal(k_b, (C_OUT,), jnp.float32)

    y = autoshape_forward(imgs, weight, bias)               # (N, H*W, 5+NC) bf16
    y = jax.block_until_ready(y)

    # glue: rescale predicted boxes from the letterboxed shape back to original
    boxes = scale_coords_glue(y[..., :4].astype(jnp.float32) * jnp.float32(max(H, W)),
                              shape1=(H, W), shape0=(H, W))
    boxes = jax.block_until_ready(boxes)

    # reference check of the kernel math in plain JAX (f32 everywhere)
    x_f32 = imgs.reshape(-1, C_IN).astype(jnp.float32) / 255.0
    logits = x_f32 @ weight + bias
    ref = (1.0 / (1.0 + jnp.exp(-logits))).reshape(N, H * W, C_OUT)
    err = jnp.max(jnp.abs(y.astype(jnp.float32) - ref))
    assert jnp.allclose(y.astype(jnp.float32), ref, atol=2e-2), (
        f"kernel mismatch vs reference, max abs err {err}")

    print("KERNEL_OK")
</pallas_src>

<mosaic_0001>
module attributes {stable_mosaic.version = 11 : i64} {
  func.func @_autoshape_kernel(%arg0: i32, %arg1: memref<3x512xi8, #tpu.memory_space<vmem>>, %arg2: memref<9x3xf32, #tpu.memory_space<vmem>>, %arg3: memref<9x1xf32, #tpu.memory_space<vmem>>, %arg4: memref<9x512xbf16, #tpu.memory_space<vmem>>) attributes {dimension_semantics = [#tpu.dimension_semantics<parallel>], iteration_bounds = array<i64: 1>, scalar_prefetch = 0 : i64, scratch_operands = 0 : i64, tpu.core_type = #tpu.core_type<tc>, window_params = [{transform_indices = @transform_0, window_bounds = array<i64: 3, 512>}, {pipeline_mode = #tpu.pipeline_mode<synchronous>, transform_indices = @transform_1, window_bounds = array<i64: 9, 3>}, {pipeline_mode = #tpu.pipeline_mode<synchronous>, transform_indices = @transform_2, window_bounds = array<i64: 9, 1>}, {transform_indices = @transform_3, window_bounds = array<i64: 9, 512>}]} {
    %c0 = arith.constant 0 : index
    %c0_0 = arith.constant 0 : index
    %0 = vector.load %arg1[%c0, %c0_0] : memref<3x512xi8, #tpu.memory_space<vmem>>, vector<3x512xi8>
    %1 = arith.extsi %0 : vector<3x512xi8> to vector<3x512xi32>
    %c0_i32 = arith.constant 0 : i32
    %2 = vector.broadcast %c0_i32 : i32 to vector<3x512xi32>
    %3 = arith.cmpi slt, %1, %2 : vector<3x512xi32>
    %c256_i32 = arith.constant 256 : i32
    %4 = vector.broadcast %c256_i32 : i32 to vector<3x512xi32>
    %5 = arith.addi %1, %4 : vector<3x512xi32>
    %6 = arith.select %3, %5, %1 : vector<3x512xi1>, vector<3x512xi32>
    %7 = arith.sitofp %6 : vector<3x512xi32> to vector<3x512xf32>
    %c0_1 = arith.constant 0 : index
    %c0_2 = arith.constant 0 : index
    %8 = vector.load %arg3[%c0_1, %c0_2] : memref<9x1xf32, #tpu.memory_space<vmem>>, vector<9x1xf32>
    %c0_3 = arith.constant 0 : index
    %c0_4 = arith.constant 0 : index
    %9 = vector.load %arg2[%c0_3, %c0_4] : memref<9x3xf32, #tpu.memory_space<vmem>>, vector<9x1xf32>
    %10 = vector.extract_strided_slice %7 {offsets = [0, 0], sizes = [1, 512], strides = [1, 1]} : vector<3x512xf32> to vector<1x512xf32>
    %11 = vector.broadcast %9 : vector<9x1xf32> to vector<9x512xf32>
    %12 = vector.broadcast %10 : vector<1x512xf32> to vector<9x512xf32>
    %13 = arith.mulf %11, %12 : vector<9x512xf32>
    %14 = vector.broadcast %8 : vector<9x1xf32> to vector<9x512xf32>
    %15 = arith.addf %14, %13 : vector<9x512xf32>
    %c0_5 = arith.constant 0 : index
    %c1 = arith.constant 1 : index
    %16 = vector.load %arg2[%c0_5, %c1] : memref<9x3xf32, #tpu.memory_space<vmem>>, vector<9x1xf32>
    %17 = vector.extract_strided_slice %7 {offsets = [1, 0], sizes = [1, 512], strides = [1, 1]} : vector<3x512xf32> to vector<1x512xf32>
    %18 = vector.broadcast %16 : vector<9x1xf32> to vector<9x512xf32>
    %19 = vector.broadcast %17 : vector<1x512xf32> to vector<9x512xf32>
    %20 = arith.mulf %18, %19 : vector<9x512xf32>
    %21 = arith.addf %15, %20 : vector<9x512xf32>
    %c0_6 = arith.constant 0 : index
    %c2 = arith.constant 2 : index
    %22 = vector.load %arg2[%c0_6, %c2] : memref<9x3xf32, #tpu.memory_space<vmem>>, vector<9x1xf32>
    %23 = vector.extract_strided_slice %7 {offsets = [2, 0], sizes = [1, 512], strides = [1, 1]} : vector<3x512xf32> to vector<1x512xf32>
    %24 = vector.broadcast %22 : vector<9x1xf32> to vector<9x512xf32>
    %25 = vector.broadcast %23 : vector<1x512xf32> to vector<9x512xf32>
    %26 = arith.mulf %24, %25 : vector<9x512xf32>
    %27 = arith.addf %21, %26 : vector<9x512xf32>
    %cst = arith.constant 0.000000e+00 : f32
    %28 = vector.broadcast %cst : f32 to vector<9x512xf32>
    %29 = arith.subf %28, %27 : vector<9x512xf32>
    %30 = math.exp %29 : vector<9x512xf32>
    %cst_7 = arith.constant 1.000000e+00 : f32
    %31 = vector.broadcast %cst_7 : f32 to vector<9x512xf32>
    %32 = arith.addf %31, %30 : vector<9x512xf32>
    %33 = tpu.reciprocal %32 {approx = true} : vector<9x512xf32> -> vector<9x512xf32>
    %34 = arith.truncf %33 : vector<9x512xf32> to vector<9x512xbf16>
    %c0_8 = arith.constant 0 : index
    %c0_9 = arith.constant 0 : index
    %35 = vector.load %arg4[%c0_8, %c0_9] : memref<9x512xbf16, #tpu.memory_space<vmem>>, vector<9x512xbf16>
    tpu.vector_store %arg4[%c0_8, %c0_9], %34 {strides = array<i32>} : memref<9x512xbf16, #tpu.memory_space<vmem>>, vector<9x512xbf16>,
    return
  }
  func.func @transform_0(%arg0: i32) -> (i32, i32) {
    %c0_i32 = arith.constant 0 : i32
    %c0_i32_0 = arith.constant 0 : i32
    return %c0_i32, %arg0 : i32, i32
  }
  func.func @transform_1(%arg0: i32) -> (i32, i32) {
    %c0_i32 = arith.constant 0 : i32
    %c0_i32_0 = arith.constant 0 : i32
    %c0_i32_1 = arith.constant 0 : i32
    return %c0_i32, %c0_i32_0 : i32, i32
  }
  func.func @transform_2(%arg0: i32) -> (i32, i32) {
    %c0_i32 = arith.constant 0 : i32
    %c0_i32_0 = arith.constant 0 : i32
    %c0_i32_1 = arith.constant 0 : i32
    return %c0_i32, %c0_i32_0 : i32, i32
  }
  func.func @transform_3(%arg0: i32) -> (i32, i32) {
    %c0_i32 = arith.constant 0 : i32
    %c0_i32_0 = arith.constant 0 : i32
    return %c0_i32, %arg0 : i32, i32
  }
}

</mosaic_0001>

<bundles_post_ra>
// kernel: tpu_custom_call.1
= control target key start
LH: loop header
LB: loop body
LE: loop exit
PB: predicated region body
PF: predicated region fallthrough
CT: control target
= control target key end

     0   :  { %v394_v2 = vmov 0   ;;  %s459_s0 = inlined_call_operand.vmem [shape: s8[3,512], index: 0, kind: input, shape index: {}]   ;;  %s460_s1 = inlined_call_operand.vmem [shape: f32[9,3], index: 1, kind: input, shape index: {}]   ;;  %s461_s2 = inlined_call_operand.vmem [shape: f32[9,1], index: 2, kind: input, shape index: {}]   ;;  %s462_s3 = inlined_call_operand.hbm [shape: bf16[9,512], index: 3, kind: output, shape index: {}]  }
   0x1   :  { %v29_v0 = vld [vmem:[%s460_s1 + $0x8] sm:$0x1]  ;;  %334 = vset.pattern.permute.xlu1 %v394_v2  ;;  %333 = vset.pattern.permute.xlu0 %v394_v2 }
   0x2   :  { %v27_v1 = vld [vmem:[%s461_s2 + $0x8] sm:$0x1]  ;;  %37 = vperm.xlu0 %333, %v29_v0  }
   0x3   :  { %93 = vperm.xlu1 %334, %v27_v1  }
   0x4   :  { %8 = vsyncpa [#allocation3], 0  ;;  %v28_v3 = vld [vmem:[%s460_s1] sm:$0xff]  ;;  %v395_v4 = vmov 1   ;;  %v396_v6 = vmov 2   ;;  %v42_v10 = vlaneseq  ;;  %vm290_vm2 = vcmask 1040384  }
   0x5   :  { %v26_v5 = vld [vmem:[%s461_s2] sm:$0xff]  ;;  %vm291_vm3 = vsmask.f32 256  ;;  %vm293_vm4 = vcmask 1044484   ;;  %vm294_vm5 = vsmask.f32 4352 }
   0x6   :  { %32 = vperm.xlu0 %333, %v28_v3   ;;  %v15_v7 = vld [vmem:[%s459_s0] sm:$0xf]  ;;  %v43_v13 = vshrl.u32 %v42_v10, 7  ;;  %vm435_vm6 = vmand %vm290_vm2, %vm291_vm3  ;;  %s397_s0 = smov [#allocation2]  }
   0x7   :  { %335 = vset.pattern.permute.xlu1 %v395_v4  ;;  %v16_v8 = vunpack.c.0.s8 %v15_v7  ;;  %v17_v9 = vunpack.c.1.s8 %v15_v7  ;;  %vm439_vm7 = vmand %vm293_vm4, %vm294_vm5  ;;  %s308_s1 = sshll.u32 %s397_s0, 4  ;;  %s309_s1 = int_to_ptr.vmem [resolvable:$true] %s308_s1 }
   0x8   :  { %109 = vperm.xlu1 %335, %v29_v0   ;;  %v44_v16 = vsub.s32 0, %v43_v13  ;;  %v48_v17 = vsub.s32 4, %v43_v13  ;;  %v114_v24 = vsub.s32 1, %v43_v13  ;;  %v118_v25 = vsub.s32 5, %v43_v13  ;;  %vm296_vm8 = vmor %vm439_vm7, %vm435_vm6  ;;  %s370_s2 = scalar_lea.vmem %s309_s1, 512  ;;  %p375_p1 = scmp.lt.s32.totalorder %s309_s1, %s309_s1 }
   0x9   :  { %v20_v11 = vadd.s32 256, %v16_v8  ;;  %v21_v12 = vadd.s32 256, %v17_v9  ;;  %vm18_vm0 = vcmp.lt.s32.totalorder %v16_v8, 0  ;;  %vm19_vm1 = vcmp.lt.s32.totalorder %v17_v9, 0  ;;  %p371_p0 = scmp.ne.s32.totalorder %s309_s1, %s370_s2  ;;  %p376_p2 = scmp.lt.s32.totalorder %s370_s2, %s370_s2 }
   0xa   :  { %88 = vperm.xlu0 %333, %v26_v5   ;;  %v174_v26 = vsub.s32 2, %v43_v13  ;;  %v178_v27 = vsub.s32 6, %v43_v13 }
   0xb   :  { %v22_v14 = vsel %vm18_vm0, %v20_v11, %v16_v8  ;;  %v23_v15 = vsel %vm19_vm1, %v21_v12, %v17_v9  ;;  %p377_p3 = por %p376_p2, %p375_p1 }
   0xc   :  { %105 = vperm.xlu1 %335, %v28_v3   ;;  %v24_v18 = vcvt.s32.f32 %v22_v14  ;;  %v25_v19 = vcvt.s32.f32 %v23_v15 }
   0xd   :  { %p378_p4 = pnand %p377_p3, %p371_p0 }
   0xe   :  { %336 = vset.pattern.permute.xlu0 %v396_v6  ;;  %v45_v20 = vrot.slane %v24_v18, %v44_v16  ;;  %v49_v21 = vrot.slane %v24_v18, %v48_v17  ;;  %v53_v22 = vrot.slane %v25_v19, %v44_v16  ;;  %v57_v23 = vrot.slane %v25_v19, %v48_v17 }
   0xf   :  { %169 = vperm.xlu0 %336, %v29_v0   ;;  %v115_v34 = vrot.slane %v24_v18, %v114_v24  ;;  %v119_v35 = vrot.slane %v24_v18, %v118_v25  ;;  %v123_v36 = vrot.slane %v25_v19, %v114_v24  ;;  %v127_v37 = vrot.slane %v25_v19, %v118_v25 }
  0x10   :  { %337 = vset.pattern.permute.xlu1 %v396_v6  ;;  %v65_v28 = vrot.slane %v45_v20, %v44_v16  ;;  %v69_v29 = vrot.slane %v49_v21, %v44_v16  ;;  %v73_v30 = vrot.slane %v53_v22, %v44_v16  ;;  %v77_v31 = vrot.slane %v57_v23, %v44_v16 }
  0x11   :  { %165 = vperm.xlu1 %337, %v28_v3   ;;  %v175_v38 = vrot.slane %v24_v18, %v174_v26  ;;  %v179_v39 = vrot.slane %v24_v18, %v178_v27  ;;  %v183_v40 = vrot.slane %v25_v19, %v174_v26  ;;  %v187_v41 = vrot.slane %v25_v19, %v178_v27 }
  0x12   :  { %v135_v47 = vrot.slane %v115_v34, %v114_v24  ;;  %v139_v48 = vrot.slane %v119_v35, %v114_v24  ;;  %v143_v49 = vrot.slane %v123_v36, %v114_v24  ;;  %v147_v50 = vrot.slane %v127_v37, %v114_v24 }
  0x13   :  { %v195_v52 = vrot.slane %v175_v38, %v174_v26  ;;  %v199_v53 = vrot.slane %v179_v39, %v174_v26  ;;  %v203_v54 = vrot.slane %v183_v40, %v174_v26  ;;  %v207_v55 = vrot.slane %v187_v41, %v174_v26 }
  0x81   :  { %v38_v32 = vpop.permute.xlu0 %37 }
  0x82   :  { %v94_v33 = vpop.permute.xlu1 %93  ;;  %v82_v42 = vmul.f32 %v65_v28, %v38_v32  ;;  %v83_v43 = vmul.f32 %v69_v29, %v38_v32  ;;  %v84_v44 = vmul.f32 %v73_v30, %v38_v32  ;;  %v85_v45 = vmul.f32 %v77_v31, %v38_v32 }
  0x84   :  { %v100_v56 = vadd.f32 %v94_v33, %v82_v42  ;;  %v101_v57 = vadd.f32 %v94_v33, %v83_v43  ;;  %v102_v58 = vadd.f32 %v94_v33, %v84_v44  ;;  %v103_v59 = vadd.f32 %v94_v33, %v85_v45 }
  0x85   :  { %v33_v46 = vpop.permute.xlu0 %32 }
  0x86   :  { %v78_v60 = vmul.f32 %v65_v28, %v33_v46  ;;  %v79_v61 = vmul.f32 %v69_v29, %v33_v46  ;;  %v80_v62 = vmul.f32 %v73_v30, %v33_v46  ;;  %v81_v63 = vmul.f32 %v77_v31, %v33_v46 }
  0x87   :  { %v110_v51 = vpop.permute.xlu1 %109 }
  0x88   :  { %v152_v0 = vmul.f32 %v135_v47, %v110_v51  ;;  %v153_v1 = vmul.f32 %v139_v48, %v110_v51  ;;  %v154_v2 = vmul.f32 %v143_v49, %v110_v51  ;;  %v155_v3 = vmul.f32 %v147_v50, %v110_v51 }
  0x89   :  { %v89_v4 = vpop.permute.xlu0 %88 }
  0x8a   :  { %v96_v5 = vadd.f32 %v89_v4, %v78_v60  ;;  %v97_v6 = vadd.f32 %v89_v4, %v79_v61  ;;  %v98_v7 = vadd.f32 %v89_v4, %v80_v62  ;;  %v99_v8 = vadd.f32 %v89_v4, %v81_v63 }
  0x8b   :  { %v106_v9 = vpop.permute.xlu1 %105  ;;  %v160_v14 = vadd.f32 %v152_v0, %v100_v56  ;;  %v161_v15 = vadd.f32 %v153_v1, %v101_v57  ;;  %v162_v16 = vadd.f32 %v154_v2, %v102_v58  ;;  %v163_v17 = vadd.f32 %v155_v3, %v103_v59 }
  0x8c   :  { %v148_v10 = vmul.f32 %v135_v47, %v106_v9  ;;  %v149_v11 = vmul.f32 %v139_v48, %v106_v9  ;;  %v150_v12 = vmul.f32 %v143_v49, %v106_v9  ;;  %v151_v13 = vmul.f32 %v147_v50, %v106_v9 }
  0x8e   :  { %v170_v18 = vpop.permute.xlu0 %169  ;;  %v156_v19 = vadd.f32 %v148_v10, %v96_v5  ;;  %v157_v20 = vadd.f32 %v149_v11, %v97_v6  ;;  %v158_v21 = vadd.f32 %v150_v12, %v98_v7  ;;  %v159_v22 = vadd.f32 %v151_v13, %v99_v8  ;;  %v297_v12 = vld [vmem:[#allocation2 + $0x10] sm:$0x11] }
  0x8f   :  { %v212_v23 = vmul.f32 %v195_v52, %v170_v18  ;;  %v213_v24 = vmul.f32 %v199_v53, %v170_v18  ;;  %v214_v25 = vmul.f32 %v203_v54, %v170_v18  ;;  %v215_v26 = vmul.f32 %v207_v55, %v170_v18 }
  0x90   :  { %v166_v27 = vpop.permute.xlu1 %165 }
  0x91   :  { %v208_v28 = vmul.f32 %v195_v52, %v166_v27  ;;  %v209_v29 = vmul.f32 %v199_v53, %v166_v27  ;;  %v210_v30 = vmul.f32 %v203_v54, %v166_v27  ;;  %v211_v31 = vmul.f32 %v207_v55, %v166_v27 }
  0x92   :  { %v220_v32 = vadd.f32 %v212_v23, %v160_v14  ;;  %v221_v33 = vadd.f32 %v213_v24, %v161_v15  ;;  %v222_v34 = vadd.f32 %v214_v25, %v162_v16  ;;  %v223_v35 = vadd.f32 %v215_v26, %v163_v17  ;;  %v300_v16 = vld [vmem:[#allocation2 + $0x18] sm:$0x11] }
  0x93   :  { %v216_v36 = vadd.f32 %v208_v28, %v156_v19  ;;  %v217_v37 = vadd.f32 %v209_v29, %v157_v20  ;;  %v218_v38 = vadd.f32 %v210_v30, %v158_v21  ;;  %v219_v39 = vadd.f32 %v211_v31, %v159_v22 }
  0x94   :  { %v228_v40 = vsub.f32 0.0, %v220_v32  ;;  %v229_v41 = vsub.f32 0.0, %v221_v33  ;;  %v230_v42 = vsub.f32 0.0, %v222_v34  ;;  %v231_v43 = vsub.f32 0.0, %v223_v35 }
  0x95   :  { %v224_v44 = vsub.f32 0.0, %v216_v36  ;;  %v225_v45 = vsub.f32 0.0, %v217_v37  ;;  %v226_v46 = vsub.f32 0.0, %v218_v38  ;;  %v227_v51 = vsub.f32 0.0, %v219_v39 }
  0x96   :  { %v240_v47 = vmul.f32 1.442695, %v228_v40  ;;  %v242_v48 = vmul.f32 1.442695, %v229_v41  ;;  %v244_v49 = vmul.f32 1.442695, %v230_v42 }
  0x97   :  { %v246_v50 = vmul.f32 1.442695, %v231_v43  ;;  %v232_v52 = vmul.f32 1.442695, %v224_v44  ;;  %v234_v53 = vmul.f32 1.442695, %v225_v45 }
  0x98   :  { %338 = vpow2.f32 %v240_v47  ;;  %v236_v54 = vmul.f32 1.442695, %v226_v46  ;;  %v238_v55 = vmul.f32 1.442695, %v227_v51 }
  0x99   :  { %340 = vpow2.f32 %v242_v48 }
  0x9a   :  { %342 = vpow2.f32 %v244_v49 }
  0x9b   :  { %344 = vpow2.f32 %v246_v50 }
  0x9c   :  { %346 = vpow2.f32 %v232_v52 }
  0x9d   :  { %348 = vpow2.f32 %v234_v53 }
  0x9e   :  { %350 = vpow2.f32 %v236_v54 }
  0x9f   :  { %352 = vpow2.f32 %v238_v55 }
  0xa2   :  { %v339_v56 = vpop.eup %338 }
  0xa3   :  { %v341_v57 = vpop.eup %340  ;;  %v252_v58 = vadd.f32 1.0, %v339_v56 }
  0xa4   :  { %v343_v59 = vpop.eup %342  ;;  %v253_v60 = vadd.f32 1.0, %v341_v57 }
  0xa5   :  { %v345_v61 = vpop.eup %344  ;;  %v254_v62 = vadd.f32 1.0, %v343_v59  ;;  %354 = vrcp.f32 %v252_v58 }
  0xa6   :  { %v347_v63 = vpop.eup %346  ;;  %v255_v0 = vadd.f32 1.0, %v345_v61  ;;  %356 = vrcp.f32 %v253_v60 }
  0xa7   :  { %v349_v1 = vpop.eup %348  ;;  %358 = vrcp.f32 %v254_v62  ;;  %v248_v2 = vadd.f32 1.0, %v347_v63 }
  0xa8   :  { %v351_v3 = vpop.eup %350  ;;  %360 = vrcp.f32 %v255_v0  ;;  %v249_v4 = vadd.f32 1.0, %v349_v1 }
  0xa9   :  { %v353_v5 = vpop.eup %352  ;;  %v250_v6 = vadd.f32 1.0, %v351_v3  ;;  %362 = vrcp.f32 %v248_v2 }
  0xaa   :  { %v251_v7 = vadd.f32 1.0, %v353_v5  ;;  %364 = vrcp.f32 %v249_v4 }
  0xab   :  { %366 = vrcp.f32 %v250_v6 }
  0xac   :  { %368 = vrcp.f32 %v251_v7 }
  0xaf   :  { %v355_v10 = vpop.eup %354 }
  0xb0   :  { %v357_v11 = vpop.eup %356 }
  0xb1   :  { %v359_v13 = vpop.eup %358  ;;  %v325_v14 = vpack.c.bf16 %v357_v11, %v355_v10 }
  0xb2   :  { %v361_v15 = vpop.eup %360 }
  0xb3   :  { %v363_v17 = vpop.eup %362  ;;  %v326_v18 = vpack.c.bf16 %v361_v15, %v359_v13  ;;  %v298_v19 = vsel %vm296_vm8, %v325_v14, %v297_v12 }
  0xb4   :  { %v365_v20 = vpop.eup %364  ;;  %299 = vst [vmem:[#allocation2 + $0x10] sm:$0x11] %v298_v19 }
  0xb5   :  { %v367_v21 = vpop.eup %366  ;;  %v323_v22 = vpack.c.bf16 %v365_v20, %v363_v17  ;;  %v301_v23 = vsel %vm296_vm8, %v326_v18, %v300_v16 }
  0xb6   :  { %v369_v24 = vpop.eup %368  ;;  %302 = vst [vmem:[#allocation2 + $0x18] sm:$0x11] %v301_v23 }
  0xb7   :  { %v324_v25 = vpack.c.bf16 %v369_v24, %v367_v21  ;;  %288 = vst [vmem:[#allocation2] sm:$0xff] %v323_v22 }
  0xb9   :  { %289 = vst [vmem:[#allocation2 + $0x8] sm:$0xff] %v324_v25 }
  0xba   :  { %381 = shalt.err (!%p378_p4)
}
  0xbb   :  { %s382_s24 = scalar_lea.hbm %s462_s3, 512 }
  0xbc   :  { %p383_p5 = scmp.ne.s32.totalorder %s462_s3, %s382_s24  ;;  %p386_p6 = scmp.lt.u32.totalorder %s382_s24, %s462_s3 }
  0xbe   :  { %p388_p7 = pnand %p386_p6, %p383_p5 }
  0xc0   :  { %391 = shalt.err (!%p388_p7)
}
  0xc1   :  { %s398_s29 = smov 256   ;;  %s399_s30 = smov 16  }
  0xc2   :  { %314 = dma.vmem_to_hbm [thread:$0]  %s309_s1, 512, %s462_s3, [#allocation3], %s398_s29, %s398_s29, %s399_s30  }
  0xc3   :  { %392 = dma.done.wait [#allocation3], 512  }
  0xc4   :  { %393 = vsyncadd [#allocation3], 4294966784 }
  0xc5   :  { %318 = vsyncpa [#allocation3], 1 }

</bundles_post_ra>
